<compile_context>
chip_gen: v6e
topology: v6e:2x2x1
jax: 0.10.0
libtpu: 0.0.40
codegen_flags: <defaults>
</compile_context>

<pallas_src>
import functools

import jax
import jax.numpy as jnp
from jax.experimental import pallas as pl
from jax.experimental.pallas import tpu as pltpu

MARGIN = 0.2

# Sublane packing per itemsize: f32 -> 8 rows, bf16 -> 16, int8/fp8 -> 32.
_SUBLANE_ALIGN = {4: 8, 2: 16, 1: 32}
_TILE_B_MAX = 1024          # mem-bound roofline plateaus around 512-1024 rows
_TILE_D_MAX = 1024          # feature chunk (multiple of 128 lanes)
_VMEM_BUDGET_BYTES = 24 * 1024 * 1024   # leave headroom under the 32 MiB limit
_VMEM_LIMIT_BYTES = 32 * 1024 * 1024    # fits v5e/v6e/v7x scoped VMEM


def _round_up(x: int, m: int) -> int:
    return -(-x // m) * m


def _triplet_loss_kernel(a_ref, p_ref, n_ref, partial_ref,
                         pos_sq_ref, neg_sq_ref, *,
                         batch_size, feat, tile_b, tile_d, margin):
    """Grid step (i, j): accumulate squared distances for feature chunk j of
    batch tile i; at the last chunk emit sum(relu(||a-p|| - ||a-n|| + m))."""
    i = pl.program_id(0)
    j = pl.program_id(1)
    num_fchunks = pl.num_programs(1)

    @pl.when(j == 0)
    def _():
        pos_sq_ref[...] = jnp.zeros_like(pos_sq_ref)
        neg_sq_ref[...] = jnp.zeros_like(neg_sq_ref)

    a = a_ref[...].astype(jnp.float32)
    p = p_ref[...].astype(jnp.float32)
    n = n_ref[...].astype(jnp.float32)

    pos_diff = a - p
    neg_diff = a - n

    # Ragged last feature chunk: zero the lanes past the true feature dim so
    # garbage in the padded VMEM lanes never enters the squared sums.
    if feat % tile_d != 0:
        col = jax.lax.broadcasted_iota(jnp.int32, (tile_b, tile_d), 1) + j * tile_d
        lane_ok = col < feat
        pos_diff = jnp.where(lane_ok, pos_diff, 0.0)
        neg_diff = jnp.where(lane_ok, neg_diff, 0.0)

    pos_sq_ref[...] += jnp.sum(pos_diff * pos_diff, axis=1, keepdims=True)
    neg_sq_ref[...] += jnp.sum(neg_diff * neg_diff, axis=1, keepdims=True)

    @pl.when(j == num_fchunks - 1)
    def _():
        pos_d = jnp.sqrt(pos_sq_ref[...])        # (tile_b, 1)
        neg_d = jnp.sqrt(neg_sq_ref[...])        # (tile_b, 1)
        losses = jnp.maximum(pos_d - neg_d + margin, 0.0)
        # Ragged last batch tile: zero rows past the true batch size (handles
        # NaN/Inf from uninitialized padded rows as well).
        row = jax.lax.broadcasted_iota(jnp.int32, (tile_b, 1), 0) + i * tile_b
        losses = jnp.where(row < batch_size, losses, 0.0)
        partial_ref[0, 0] = jnp.sum(losses)


def _choose_tiles(batch: int, feat: int, itemsize: int) -> tuple[int, int]:
    """Pick (tile_b, tile_d) accounting for input buffers AND f32 temps."""
    align = _SUBLANE_ALIGN.get(itemsize, 8)

    # Feature chunk: full D when it fits, else a 128-lane multiple.
    tile_d = feat if feat <= _TILE_D_MAX else _TILE_D_MAX

    # Per batch-row VMEM: 3 inputs x 2 pipeline buffers (input dtype)
    # + ~6 f32 full-width temporaries (a/p/n casts, two diffs, squared terms).
    per_row_bytes = 3 * 2 * tile_d * itemsize + 6 * tile_d * 4
    tb = _VMEM_BUDGET_BYTES // per_row_bytes
    tb = max(align, (int(tb) // align) * align)
    tb = min(tb, _TILE_B_MAX)

    # Keep >= ~4 steps along the parallel batch axis (when B allows it) so the
    # second TensorCore on v7x has work and writeback overlaps prefetch.
    parallel_cap = max(align, _round_up(-(-batch // 4), align))
    tb = min(tb, parallel_cap)
    tb = min(tb, _round_up(batch, align))
    return tb, tile_d


def triplet_loss(anchor: jax.Array,
                 positive: jax.Array,
                 negative: jax.Array,
                 margin: float = MARGIN,
                 tile_b: int | None = None,
                 tile_d: int | None = None) -> jax.Array:
    """Scalar mean triplet loss, matching TripletLoss.forward."""
    assert anchor.shape == positive.shape == negative.shape
    assert anchor.ndim == 2, "expected (batch, features)"
    B, D = anchor.shape
    itemsize = jnp.dtype(anchor.dtype).itemsize
    align = _SUBLANE_ALIGN.get(itemsize, 8)

    auto_tb, auto_td = _choose_tiles(B, D, itemsize)
    if tile_b is None:
        tile_b = auto_tb
    if tile_d is None:
        tile_d = auto_td
    tile_b = max(align, (int(tile_b) // align) * align)   # dtype-aware sublane align
    if tile_d != D:
        assert tile_d % 128 == 0, "feature tile must be a multiple of 128 lanes"

    num_btiles = -(-B // tile_b)
    num_fchunks = -(-D // tile_d)

    kernel = functools.partial(
        _triplet_loss_kernel, batch_size=B, feat=D,
        tile_b=tile_b, tile_d=tile_d, margin=margin)

    in_spec = pl.BlockSpec((tile_b, tile_d), lambda i, j: (i, j))

    cost = pl.CostEstimate(
        flops=6 * B * D,                 # 2 subs + 2 muls + 2 adds per element
        transcendentals=2 * B,           # 2 sqrts per row
        bytes_accessed=3 * B * D * itemsize + num_btiles * 4,
    )

    partials = pl.pallas_call(
        kernel,
        out_shape=jax.ShapeDtypeStruct((num_btiles, 1), jnp.float32),
        grid=(num_btiles, num_fchunks),
        in_specs=[in_spec, in_spec, in_spec],
        out_specs=pl.BlockSpec((1, 1), lambda i, j: (i, 0), memory_space=pltpu.SMEM),
        scratch_shapes=[pltpu.VMEM((tile_b, 1), jnp.float32),
                        pltpu.VMEM((tile_b, 1), jnp.float32)],
        compiler_params=pltpu.CompilerParams(
            dimension_semantics=("parallel", "arbitrary"),
            vmem_limit_bytes=_VMEM_LIMIT_BYTES,
        ),
        cost_estimate=cost,
    )(anchor, positive, negative)

    # Final mean over the true batch size (not num_btiles * tile_b).
    return jnp.sum(partials) / jnp.float32(B)


def _reference_triplet_loss(a, p, n, margin=MARGIN):
    a = a.astype(jnp.float32); p = p.astype(jnp.float32); n = n.astype(jnp.float32)
    pos = jnp.linalg.norm(a - p, axis=1)
    neg = jnp.linalg.norm(a - n, axis=1)
    return jnp.mean(jnp.maximum(pos - neg + margin, 0.0))


if __name__ == "__main__":
    key = jax.random.PRNGKey(0)

    # 1) Small embedding batch, single tile (matches the module's (B, D) inputs).
    k1, k2, k3 = jax.random.split(key, 3)
    B, D = 8, 32
    anchor = jax.random.normal(k1, (B, D), dtype=jnp.float32)
    positive = jax.random.normal(k2, (B, D), dtype=jnp.float32)
    negative = jax.random.normal(k3, (B, D), dtype=jnp.float32)
    loss = triplet_loss(anchor, positive, negative)
    jax.block_until_ready(loss)
    ref = _reference_triplet_loss(anchor, positive, negative)
    assert jnp.allclose(loss, ref, atol=1e-5, rtol=1e-5), (loss, ref)

    # 2) Multi-tile batch grid with a ragged (masked) last batch tile.
    k4, k5, k6 = jax.random.split(jax.random.PRNGKey(1), 3)
    B2, D2 = 50, 32
    a2 = jax.random.normal(k4, (B2, D2), dtype=jnp.float32)
    p2 = jax.random.normal(k5, (B2, D2), dtype=jnp.float32)
    n2 = jax.random.normal(k6, (B2, D2), dtype=jnp.float32)
    loss2 = triplet_loss(a2, p2, n2, tile_b=16)   # 4 batch tiles, last partial
    jax.block_until_ready(loss2)
    ref2 = _reference_triplet_loss(a2, p2, n2)
    assert jnp.allclose(loss2, ref2, atol=1e-5, rtol=1e-5), (loss2, ref2)

    # 3) Feature-chunked reduction path (2 feature chunks, ragged last chunk).
    k7, k8, k9 = jax.random.split(jax.random.PRNGKey(2), 3)
    B3, D3 = 24, 160
    a3 = jax.random.normal(k7, (B3, D3), dtype=jnp.float32)
    p3 = jax.random.normal(k8, (B3, D3), dtype=jnp.float32)
    n3 = jax.random.normal(k9, (B3, D3), dtype=jnp.float32)
    loss3 = triplet_loss(a3, p3, n3, tile_d=128)  # feature reduction across grid
    jax.block_until_ready(loss3)
    ref3 = _reference_triplet_loss(a3, p3, n3)
    assert jnp.allclose(loss3, ref3, atol=1e-5, rtol=1e-5), (loss3, ref3)

    # 4) bf16 inputs: exercises the 16-row sublane alignment path.
    k10, k11, k12 = jax.random.split(jax.random.PRNGKey(3), 3)
    B4, D4 = 32, 256
    a4 = jax.random.normal(k10, (B4, D4), dtype=jnp.bfloat16)
    p4 = jax.random.normal(k11, (B4, D4), dtype=jnp.bfloat16)
    n4 = jax.random.normal(k12, (B4, D4), dtype=jnp.bfloat16)
    loss4 = triplet_loss(a4, p4, n4)
    jax.block_until_ready(loss4)
    ref4 = _reference_triplet_loss(a4, p4, n4)
    assert jnp.allclose(loss4, ref4, atol=1e-3, rtol=1e-3), (loss4, ref4)

    print("KERNEL_OK")
</pallas_src>

<mosaic_0001>
module attributes {stable_mosaic.version = 11 : i64} {
  func.func @_triplet_loss_kernel(%arg0: i32, %arg1: i32, %arg2: memref<8x32xf32, #tpu.memory_space<vmem>>, %arg3: memref<8x32xf32, #tpu.memory_space<vmem>>, %arg4: memref<8x32xf32, #tpu.memory_space<vmem>>, %arg5: memref<1x1xf32, #tpu.memory_space<smem>>, %arg6: memref<8x1xf32, #tpu.memory_space<vmem>>, %arg7: memref<8x1xf32, #tpu.memory_space<vmem>>) attributes {dimension_semantics = [#tpu.dimension_semantics<parallel>, #tpu.dimension_semantics<arbitrary>], iteration_bounds = array<i64: 1, 1>, scalar_prefetch = 0 : i64, scratch_operands = 2 : i64, tpu.core_type = #tpu.core_type<tc>, window_params = [{transform_indices = @transform_0, window_bounds = array<i64: 8, 32>}, {transform_indices = @transform_1, window_bounds = array<i64: 8, 32>}, {transform_indices = @transform_2, window_bounds = array<i64: 8, 32>}, {transform_indices = @transform_3, window_bounds = array<i64: 1, 1>}]} {
    %c0_i32 = arith.constant 0 : i32
    %0 = arith.cmpi eq, %arg1, %c0_i32 : i32
    %1 = arith.extui %0 : i1 to i32
    %c0_i32_0 = arith.constant 0 : i32
    %2 = arith.cmpi ne, %1, %c0_i32_0 : i32
    scf.if %2 {
      %cst_17 = arith.constant 0.000000e+00 : f32
      %23 = vector.broadcast %cst_17 : f32 to vector<8x1xf32>
      %c0_18 = arith.constant 0 : index
      %c0_19 = arith.constant 0 : index
      %24 = vector.load %arg6[%c0_18, %c0_19] : memref<8x1xf32, #tpu.memory_space<vmem>>, vector<8x1xf32>
      tpu.vector_store %arg6[%c0_18, %c0_19], %23 {strides = array<i32>} : memref<8x1xf32, #tpu.memory_space<vmem>>, vector<8x1xf32>,
      %cst_20 = arith.constant 0.000000e+00 : f32
      %25 = vector.broadcast %cst_20 : f32 to vector<8x1xf32>
      %c0_21 = arith.constant 0 : index
      %c0_22 = arith.constant 0 : index
      %26 = vector.load %arg7[%c0_21, %c0_22] : memref<8x1xf32, #tpu.memory_space<vmem>>, vector<8x1xf32>
      tpu.vector_store %arg7[%c0_21, %c0_22], %25 {strides = array<i32>} : memref<8x1xf32, #tpu.memory_space<vmem>>, vector<8x1xf32>,
    } else {
    }
    %c0 = arith.constant 0 : index
    %c0_1 = arith.constant 0 : index
    %3 = vector.load %arg2[%c0, %c0_1] : memref<8x32xf32, #tpu.memory_space<vmem>>, vector<8x32xf32>
    %c0_2 = arith.constant 0 : index
    %c0_3 = arith.constant 0 : index
    %4 = vector.load %arg3[%c0_2, %c0_3] : memref<8x32xf32, #tpu.memory_space<vmem>>, vector<8x32xf32>
    %c0_4 = arith.constant 0 : index
    %c0_5 = arith.constant 0 : index
    %5 = vector.load %arg4[%c0_4, %c0_5] : memref<8x32xf32, #tpu.memory_space<vmem>>, vector<8x32xf32>
    %6 = arith.subf %3, %4 : vector<8x32xf32>
    %7 = arith.subf %3, %5 : vector<8x32xf32>
    %c0_6 = arith.constant 0 : index
    %c0_7 = arith.constant 0 : index
    %8 = vector.load %arg6[%c0_6, %c0_7] : memref<8x1xf32, #tpu.memory_space<vmem>>, vector<8x1xf32>
    %9 = arith.mulf %6, %6 : vector<8x32xf32>
    %cst = arith.constant dense<0.000000e+00> : vector<8xf32>
    %10 = vector.multi_reduction <add>, %9, %cst [1] : vector<8x32xf32> to vector<8xf32>
    %11 = vector.shape_cast %10 : vector<8xf32> to vector<8x1xf32>
    %12 = arith.addf %8, %11 : vector<8x1xf32>
    %c0_8 = arith.constant 0 : index
    %c0_9 = arith.constant 0 : index
    %13 = vector.load %arg6[%c0_8, %c0_9] : memref<8x1xf32, #tpu.memory_space<vmem>>, vector<8x1xf32>
    tpu.vector_store %arg6[%c0_8, %c0_9], %12 {strides = array<i32>} : memref<8x1xf32, #tpu.memory_space<vmem>>, vector<8x1xf32>,
    %c0_10 = arith.constant 0 : index
    %c0_11 = arith.constant 0 : index
    %14 = vector.load %arg7[%c0_10, %c0_11] : memref<8x1xf32, #tpu.memory_space<vmem>>, vector<8x1xf32>
    %15 = arith.mulf %7, %7 : vector<8x32xf32>
    %cst_12 = arith.constant dense<0.000000e+00> : vector<8xf32>
    %16 = vector.multi_reduction <add>, %15, %cst_12 [1] : vector<8x32xf32> to vector<8xf32>
    %17 = vector.shape_cast %16 : vector<8xf32> to vector<8x1xf32>
    %18 = arith.addf %14, %17 : vector<8x1xf32>
    %c0_13 = arith.constant 0 : index
    %c0_14 = arith.constant 0 : index
    %19 = vector.load %arg7[%c0_13, %c0_14] : memref<8x1xf32, #tpu.memory_space<vmem>>, vector<8x1xf32>
    tpu.vector_store %arg7[%c0_13, %c0_14], %18 {strides = array<i32>} : memref<8x1xf32, #tpu.memory_space<vmem>>, vector<8x1xf32>,
    %c0_i32_15 = arith.constant 0 : i32
    %20 = arith.cmpi eq, %arg1, %c0_i32_15 : i32
    %21 = arith.extui %20 : i1 to i32
    %c0_i32_16 = arith.constant 0 : i32
    %22 = arith.cmpi ne, %21, %c0_i32_16 : i32
    scf.if %22 {
      %c0_17 = arith.constant 0 : index
      %c0_18 = arith.constant 0 : index
      %23 = vector.load %arg6[%c0_17, %c0_18] : memref<8x1xf32, #tpu.memory_space<vmem>>, vector<8x1xf32>
      %24 = math.sqrt %23 : vector<8x1xf32>
      %c0_19 = arith.constant 0 : index
      %c0_20 = arith.constant 0 : index
      %25 = vector.load %arg7[%c0_19, %c0_20] : memref<8x1xf32, #tpu.memory_space<vmem>>, vector<8x1xf32>
      %26 = math.sqrt %25 : vector<8x1xf32>
      %27 = arith.subf %24, %26 : vector<8x1xf32>
      %cst_21 = arith.constant 2.000000e-01 : f32
      %28 = vector.broadcast %cst_21 : f32 to vector<8x1xf32>
      %29 = arith.addf %27, %28 : vector<8x1xf32>
      %cst_22 = arith.constant 0.000000e+00 : f32
      %30 = vector.broadcast %cst_22 : f32 to vector<8x1xf32>
      %31 = arith.maximumf %29, %30 : vector<8x1xf32>
      %32 = tpu.iota {dimensions = array<i32: 0>} : vector<8x1xi32>
      %c8_i32 = arith.constant 8 : i32
      %33 = arith.muli %arg0, %c8_i32 : i32
      %34 = vector.broadcast %33 : i32 to vector<8x1xi32>
      %35 = arith.addi %32, %34 : vector<8x1xi32>
      %c8_i32_23 = arith.constant 8 : i32
      %36 = vector.broadcast %c8_i32_23 : i32 to vector<8x1xi32>
      %37 = arith.cmpi slt, %35, %36 : vector<8x1xi32>
      %cst_24 = arith.constant 0.000000e+00 : f32
      %38 = vector.broadcast %cst_24 : f32 to vector<8x1xf32>
      %39 = arith.select %37, %31, %38 : vector<8x1xi1>, vector<8x1xf32>
      %40 = vector.shape_cast %39 : vector<8x1xf32> to vector<1x8x1xf32>
      %cst_25 = arith.constant dense<0.000000e+00> : vector<1xf32>
      %41 = vector.multi_reduction <add>, %40, %cst_25 [1, 2] : vector<1x8x1xf32> to vector<1xf32>
      %42 = vector.shape_cast %41 : vector<1xf32> to vector<1x1x1xf32>
      %43 = vector.extract %42[0, 0, 0] : f32 from vector<1x1x1xf32>
      %c0_26 = arith.constant 0 : index
      %c0_27 = arith.constant 0 : index
      %44 = memref.load %arg5[%c0_26, %c0_27] : memref<1x1xf32, #tpu.memory_space<smem>>
      memref.store %43, %arg5[%c0_26, %c0_27] : memref<1x1xf32, #tpu.memory_space<smem>>
    } else {
    }
    return
  }
  func.func @transform_0(%arg0: i32, %arg1: i32) -> (i32, i32) {
    %c0_i32 = arith.constant 0 : i32
    return %arg0, %arg1 : i32, i32
  }
  func.func @transform_1(%arg0: i32, %arg1: i32) -> (i32, i32) {
    %c0_i32 = arith.constant 0 : i32
    return %arg0, %arg1 : i32, i32
  }
  func.func @transform_2(%arg0: i32, %arg1: i32) -> (i32, i32) {
    %c0_i32 = arith.constant 0 : i32
    return %arg0, %arg1 : i32, i32
  }
  func.func @transform_3(%arg0: i32, %arg1: i32) -> (i32, i32) {
    %c0_i32 = arith.constant 0 : i32
    %c0_i32_0 = arith.constant 0 : i32
    return %arg0, %c0_i32 : i32, i32
  }
}

</mosaic_0001>

<bundles_post_ra>
// kernel: tpu_custom_call.1
= control target key start
LH: loop header
LB: loop body
LE: loop exit
PB: predicated region body
PF: predicated region fallthrough
CT: control target
= control target key end

     0   :  { %8 = vsyncpa [#allocation5], 0  ;;  %s261_s0 = inlined_call_operand.hbm [shape: f32[8,32], index: 0, kind: input, shape index: {}]   ;;  %s262_s1 = inlined_call_operand.hbm [shape: f32[8,32], index: 1, kind: input, shape index: {}]   ;;  %s263_s2 = inlined_call_operand.hbm [shape: f32[8,32], index: 2, kind: input, shape index: {}]   ;;  %s264_s3 = inlined_call_operand.hbm [shape: f32[1,1], index: 3, kind: output, shape index: {}]  }
   0x1   :  { %9 = vsyncpa [#allocation8], 0 }
   0x2   :  { %10 = vsyncpa [#allocation6], 0  ;;  %s219_s12 = smov [#allocation7]   ;;  %s220_s14 = smov [#allocation4]  }
   0x3   :  { %s27_s13 = sshll.u32 %s219_s12, 4  ;;  %s17_s15 = sshll.u32 %s220_s14, 4  ;;  %s28_s13 = int_to_ptr.vmem [resolvable:$true] %s27_s13  ;;  %s18_s15 = int_to_ptr.vmem [resolvable:$true] %s17_s15 }
   0x4   :  { %s153_s16 = scalar_lea.vmem %s28_s13, 128  ;;  %p158_p1 = scmp.lt.s32.totalorder %s28_s13, %s28_s13 }
   0x5   :  { %p154_p0 = scmp.ne.s32.totalorder %s28_s13, %s153_s16  ;;  %p159_p2 = scmp.lt.s32.totalorder %s153_s16, %s153_s16 }
   0x7   :  { %p160_p3 = por %p159_p2, %p158_p1 }
   0x9   :  { %p161_p4 = pnand %p160_p3, %p154_p0 }
   0xb   :  { %164 = shalt.err (!%p161_p4)
}
   0xc   :  { %30 = dma.hbm_to_vmem [thread:$0]  %s262_s1, 128, %s28_s13, [#allocation8]  }
   0xd   :  { %s173_s19 = scalar_lea.vmem %s18_s15, 128  ;;  %p178_p6 = scmp.lt.s32.totalorder %s18_s15, %s18_s15 }
   0xe   :  { %p174_p5 = scmp.ne.s32.totalorder %s18_s15, %s173_s19  ;;  %p179_p7 = scmp.lt.s32.totalorder %s173_s19, %s173_s19 }
  0x10   :  { %p180_p8 = por %p179_p7, %p178_p6 }
  0x12   :  { %p181_p9 = pnand %p180_p8, %p174_p5 }
  0x14   :  { %184 = shalt.err (!%p181_p9)
}
  0x15   :  { %20 = dma.hbm_to_vmem [thread:$0]  %s261_s0, 128, %s18_s15, [#allocation5]  }
  0x16   :  { %s221_s22 = smov [#allocation9]  }
  0x17   :  { %s37_s23 = sshll.u32 %s221_s22, 4  ;;  %s38_s23 = int_to_ptr.vmem [resolvable:$true] %s37_s23 }
  0x18   :  { %s193_s24 = scalar_lea.vmem %s38_s23, 128  ;;  %p198_p11 = scmp.lt.s32.totalorder %s38_s23, %s38_s23 }
  0x19   :  { %p194_p10 = scmp.ne.s32.totalorder %s38_s23, %s193_s24  ;;  %p199_p12 = scmp.lt.s32.totalorder %s193_s24, %s193_s24 }
  0x1b   :  { %p200_p13 = por %p199_p12, %p198_p11 }
  0x1d   :  { %p201_p0 = pnand %p200_p13, %p194_p10 }
  0x1f   :  { %204 = shalt.err (!%p201_p0)
}
  0x20   :  { %40 = dma.hbm_to_vmem [thread:$0]  %s263_s2, 128, %s38_s23, [#allocation8]  }
  0x21   :  { %213 = dma.done.wait [#allocation5], 128  }
  0x22   :  { %214 = vsyncadd [#allocation5], 4294967168 }
  0x23   :  { %215 = dma.done.wait [#allocation8], 256  }
  0x24   :  { %216 = vsyncadd [#allocation8], 4294967040  ;;  %vm54_vm0 = vcmask 7168   ;;  %v222_v0 = vmov 0.0   ;;  %v57_v1 = vld [vmem:[#allocation4] sm:$0xff]  ;;  %v58_v2 = vld [vmem:[#allocation7] sm:$0xff] }
  0x25   :  { %55 = vst.msk [vmem:[#allocation2] sm:$0xff] %vm54_vm0, %v222_v0  ;;  %56 = vst.msk [vmem:[#allocation3] sm:$0xff] %vm54_vm0, %v222_v0  ;;  %v59_v3 = vld [vmem:[#allocation9] sm:$0xff]  ;;  %v60_v4 = vsub.f32 %v57_v1, %v58_v2  ;;  %vm64_vm1 = vcmask 261120   ;;  %s223_s2 = smov [#allocation10]  }
  0x26   :  { %v61_v5 = vsub.f32 %v57_v1, %v59_v3 }
  0x27   :  { %v63_v6 = vmul.f32 %v60_v4, %v60_v4 }
  0x28   :  { %v72_v7 = vmul.f32 %v61_v5, %v61_v5 }
  0x29   :  { %v65_v8 = vsel %vm64_vm1, %v63_v6, 0.0 }
  0x2a   :  { %66 = vadd.xlane.f32.xlu0 %v65_v8  ;;  %v73_v9 = vsel %vm64_vm1, %v72_v7, 0.0 }
  0x2c   :  { %v62_v10 = vld [vmem:[#allocation2] sm:$0xff]  ;;  %v71_v13 = vld [vmem:[#allocation3] sm:$0xff] }
  0x2e   :  { %74 = vadd.xlane.f32.xlu0 %v73_v9 }
  0xb3   :  { %v67_v11 = vpop.xlane.xlu0 %66 }
  0xb4   :  { %v68_v12 = vadd.f32 %v67_v11, %v62_v10 }
  0xb6   :  { %70 = vst.msk [vmem:[#allocation2] sm:$0xff] %vm54_vm0, %v68_v12 }
  0xb7   :  { %v75_v14 = vpop.xlane.xlu0 %74 }
  0xb8   :  { %v76_v15 = vadd.f32 %v75_v14, %v71_v13 }
  0xba   :  { %77 = vst.msk [vmem:[#allocation3] sm:$0xff] %vm54_vm0, %v76_v15 }
  0xbd   :  { %v81_v16 = vld [vmem:[#allocation2] sm:$0xff] }
  0xbe   :  { %141 = vrsqrt.f32 %v81_v16  ;;  %vm84_vm2 = vcmp.eq.f32.partialorder %v81_v16, inf  ;;  %v87_v23 = vand.u32 2147483648, %v81_v16  ;;  %vm86_vm4 = vcmp.eq.f32.partialorder %v81_v16, 0.0 }
  0xc1   :  { %v89_v17 = vld [vmem:[#allocation3] sm:$0xff] }
  0xc2   :  { %143 = vrsqrt.f32 %v89_v17  ;;  %vm92_vm3 = vcmp.eq.f32.partialorder %v89_v17, inf  ;;  %v95_v24 = vand.u32 2147483648, %v89_v17  ;;  %vm94_vm5 = vcmp.eq.f32.partialorder %v89_v17, 0.0 }
  0xcb   :  { %v142_v18 = vpop.eup %141 }
  0xcc   :  { %v83_v19 = vmul.f32 %v142_v18, %v81_v16 }
  0xce   :  { %v85_v21 = vsel %vm84_vm2, %v81_v16, %v83_v19 }
  0xcf   :  { %v144_v20 = vpop.eup %143  ;;  %v88_v26 = vsel %vm86_vm4, %v87_v23, %v85_v21 }
  0xd0   :  { %v91_v22 = vmul.f32 %v144_v20, %v89_v17 }
  0xd2   :  { %v93_v25 = vsel %vm92_vm3, %v89_v17, %v91_v22 }
  0xd3   :  { %v96_v27 = vsel %vm94_vm5, %v95_v24, %v93_v25 }
  0xd4   :  { %v97_v28 = vsub.f32 %v88_v26, %v96_v27 }
  0xd6   :  { %v98_v29 = vadd.f32 0.2, %v97_v28 }
  0xd8   :  { %v99_v30 = vmax.f32 %v98_v29, 0.0 }
  0xda   :  { %v107_v31 = vsel %vm54_vm0, %v99_v30, 0.0 }
  0xdb   :  { %108 = vadd.xlane.f32.xlu1 %v107_v31 }
 0x164   :  { %v109_v32 = vpop.xlane.xlu1 %108 }
 0x165   :  { %v110_v33 = vrot.slane %v109_v32, 4 }
 0x167   :  { %v111_v34 = vadd.f32 %v110_v33, %v109_v32 }
 0x169   :  { %v112_v35 = vrot.slane %v111_v34, 2 }
 0x16b   :  { %v113_v36 = vadd.f32 %v112_v35, %v111_v34 }
 0x16d   :  { %v114_v37 = vrot.slane %v113_v36, 1 }
 0x16f   :  { %v115_v38 = vadd.f32 %v114_v37, %v113_v36 }
 0x171   :  { %134 = vpush %v115_v38 }
 0x1a2   :  { %s135_s0 = spop %134 }
 0x1a3   :  { %118 = sst [smem:[#allocation10]] %s135_s0 }
 0x1a4   :  { %126 = dma.smem_to_hbm %s223_s2, 16, %s264_s3, [#allocation6]  }
 0x1a5   :  { %217 = dma.done.wait [#allocation6], 16  }
 0x1a6   :  { %218 = vsyncadd [#allocation6], 4294967280 }
 0x1a7   :  { %130 = sfence }
 0x1a8   :  { %131 = vsyncpa [#allocation5], 1 }
 0x1a9   :  { %132 = vsyncpa [#allocation8], 1 }
 0x1aa   :  { %133 = vsyncpa [#allocation6], 1 }

</bundles_post_ra>
